<compile_context>
chip_gen: v6e
topology: v6e:2x2x1
jax: 0.10.0
libtpu: 0.0.40
codegen_flags: <defaults>
</compile_context>

<pallas_src>
import functools

import jax
import jax.numpy as jnp
from jax.experimental import pallas as pl
from jax.experimental.pallas import tpu as pltpu


def digit_layer_kernel(x_ref, w_ref, g_ref, gt_ref, o_ref):
    # x_ref : (bm, K)    K = P*Vp
    # w_ref : (K, N)     N = D*Vd
    # g_ref : (N, D)     group-sum matrix (one-hot per digit)
    # gt_ref: (D, N)     its transpose (broadcast per digit)
    # o_ref : (bm, N)
    s = jnp.dot(x_ref[...], w_ref[...],
                preferred_element_type=jnp.float32)          # (bm, N)  MXU

    # per-digit squared norm: sq[b, d] = sum_k s[b, d*Vd + k]^2
    sq = jnp.dot(s * s, g_ref[...],
                 preferred_element_type=jnp.float32)         # (bm, D)  MXU

    # squash scale = |s| / (1 + |s|^2)  (one rsqrt per row on EUP)
    scale = sq * jax.lax.rsqrt(sq + 1e-9) / (1.0 + sq)       # (bm, D)

    # broadcast scale back to the lane-dense (bm, N) layout
    scale_b = jnp.dot(scale, gt_ref[...],
                      preferred_element_type=jnp.float32)    # (bm, N)  MXU

    o_ref[...] = (s * scale_b).astype(o_ref.dtype)


@functools.partial(jax.jit, static_argnames=())
def digit_layer_forward(x, W):
    """x: (B, P, Vp, 1) f32,  W: (P, D, Vd, Vp) f32  ->  (B, D, Vd, 1) f32."""
    B, P, Vp, _ = x.shape
    _, D, Vd, _ = W.shape
    K = P * Vp            # 256: exactly one 256-deep MXU pass on v6e/v7x
    N = D * Vd            # 160: lane-dense output store

    # host-side, one-time layout plumbing (no per-step cost)
    x2 = x.reshape(B, K)                                          # (B, 256)
    W2 = jnp.transpose(W, (0, 3, 1, 2)).reshape(K, N)             # (256, 160)
    G = jnp.repeat(jnp.eye(D, dtype=jnp.float32), Vd, axis=0)     # (160, 10)
    GT = G.T                                                      # (10, 160)

    # batch tiling: full-sublane rows, >=1 grid block, pad with zero rows
    bm = min(128, ((B + 7) // 8) * 8)
    B_pad = pl.cdiv(B, bm) * bm
    if B_pad != B:
        x2 = jnp.pad(x2, ((0, B_pad - B), (0, 0)))

    out = pl.pallas_call(
        digit_layer_kernel,
        out_shape=jax.ShapeDtypeStruct((B_pad, N), jnp.float32),
        grid_spec=pltpu.PrefetchScalarGridSpec(
            num_scalar_prefetch=0,
            grid=(B_pad // bm,),
            in_specs=[
                pl.BlockSpec((bm, K), lambda i: (i, 0)),
                pl.BlockSpec((K, N), lambda i: (0, 0)),   # W2 stays resident
                pl.BlockSpec((N, D), lambda i: (0, 0)),
                pl.BlockSpec((D, N), lambda i: (0, 0)),
            ],
            out_specs=pl.BlockSpec((bm, N), lambda i: (i, 0)),
        ),
        compiler_params=pltpu.CompilerParams(
            dimension_semantics=("parallel",)),
    )(x2, W2, G, GT)

    v = out[:B].reshape(B, D, Vd)
    return v[..., None]                                           # (B, D, Vd, 1)


def digit_layer_reference(x, W):
    """Pure-JAX reference of the same forward pass."""
    x3 = x[..., 0]                                                # (B, P, Vp)
    u_hat = jnp.einsum('pdkm,bpm->bpdk', W, x3)                   # (B, P, D, Vd)
    s_j = u_hat.sum(axis=1)                                       # (B, D, Vd)
    sq = jnp.sum(s_j * s_j, axis=-1, keepdims=True)
    v_j = (sq / (1.0 + sq)) * s_j / jnp.sqrt(sq)
    return v_j[..., None]


if __name__ == "__main__":
    # Small, deterministic shapes consistent with the module
    B = 2                     # batch
    P = 32                    # primary_capsule_num
    D = 10                    # digit_channels
    Vp = 8                    # primary_vec_length
    Vd = 16                   # digit_vec_length

    key = jax.random.PRNGKey(0)
    kx, kw = jax.random.split(key)
    x = jax.random.normal(kx, (B, P, Vp, 1), dtype=jnp.float32)
    # nn.Parameter(torch.randn(P, D, Vd, Vp) / 100.0)
    W = jax.random.normal(kw, (P, D, Vd, Vp), dtype=jnp.float32) / 100.0

    v = digit_layer_forward(x, W)
    v = jax.block_until_ready(v)

    v_ref = digit_layer_reference(x, W)
    assert v.shape == (B, D, Vd, 1)
    assert jnp.allclose(v, v_ref, atol=1e-5, rtol=1e-5), "mismatch vs reference"

    print("KERNEL_OK")
</pallas_src>

<mosaic_0001>
module attributes {stable_mosaic.version = 11 : i64} {
  func.func @digit_layer_kernel(%arg0: i32, %arg1: memref<8x256xf32, #tpu.memory_space<vmem>>, %arg2: memref<256x160xf32, #tpu.memory_space<vmem>>, %arg3: memref<160x10xf32, #tpu.memory_space<vmem>>, %arg4: memref<10x160xf32, #tpu.memory_space<vmem>>, %arg5: memref<8x160xf32, #tpu.memory_space<vmem>>) attributes {dimension_semantics = [#tpu.dimension_semantics<parallel>], iteration_bounds = array<i64: 1>, scalar_prefetch = 0 : i64, scratch_operands = 0 : i64, tpu.core_type = #tpu.core_type<tc>, window_params = [{transform_indices = @transform_0, window_bounds = array<i64: 8, 256>}, {pipeline_mode = #tpu.pipeline_mode<synchronous>, transform_indices = @transform_1, window_bounds = array<i64: 256, 160>}, {pipeline_mode = #tpu.pipeline_mode<synchronous>, transform_indices = @transform_2, window_bounds = array<i64: 160, 10>}, {pipeline_mode = #tpu.pipeline_mode<synchronous>, transform_indices = @transform_3, window_bounds = array<i64: 10, 160>}, {transform_indices = @transform_4, window_bounds = array<i64: 8, 160>}]} {
    %c0 = arith.constant 0 : index
    %c0_0 = arith.constant 0 : index
    %0 = vector.load %arg1[%c0, %c0_0] : memref<8x256xf32, #tpu.memory_space<vmem>>, vector<8x256xf32>
    %c0_1 = arith.constant 0 : index
    %c0_2 = arith.constant 0 : index
    %1 = vector.load %arg2[%c0_1, %c0_2] : memref<256x160xf32, #tpu.memory_space<vmem>>, vector<256x160xf32>
    %cst = arith.constant dense<0.000000e+00> : vector<8x160xf32>
    %2 = tpu.matmul %0, %1, %cst {dimension_numbers = #tpu.dot_dimension_numbers<[1], [0], [0], [1], [0, 0, 1, 1], [], []>} : vector<8x256xf32>, vector<256x160xf32>, vector<8x160xf32> -> vector<8x160xf32>
    %3 = arith.mulf %2, %2 : vector<8x160xf32>
    %c0_3 = arith.constant 0 : index
    %c0_4 = arith.constant 0 : index
    %4 = vector.load %arg3[%c0_3, %c0_4] : memref<160x10xf32, #tpu.memory_space<vmem>>, vector<160x10xf32>
    %cst_5 = arith.constant dense<0.000000e+00> : vector<8x10xf32>
    %5 = tpu.matmul %3, %4, %cst_5 {dimension_numbers = #tpu.dot_dimension_numbers<[1], [0], [0], [1], [0, 0, 1, 1], [], []>} : vector<8x160xf32>, vector<160x10xf32>, vector<8x10xf32> -> vector<8x10xf32>
    %cst_6 = arith.constant 9.99999971E-10 : f32
    %6 = vector.broadcast %cst_6 : f32 to vector<8x10xf32>
    %7 = arith.addf %5, %6 : vector<8x10xf32>
    %8 = math.rsqrt %7 : vector<8x10xf32>
    %9 = arith.mulf %5, %8 : vector<8x10xf32>
    %cst_7 = arith.constant 1.000000e+00 : f32
    %10 = vector.broadcast %cst_7 : f32 to vector<8x10xf32>
    %11 = arith.addf %10, %5 : vector<8x10xf32>
    %12 = arith.divf %9, %11 : vector<8x10xf32>
    %c0_8 = arith.constant 0 : index
    %c0_9 = arith.constant 0 : index
    %13 = vector.load %arg4[%c0_8, %c0_9] : memref<10x160xf32, #tpu.memory_space<vmem>>, vector<10x160xf32>
    %cst_10 = arith.constant dense<0.000000e+00> : vector<8x160xf32>
    %14 = tpu.matmul %12, %13, %cst_10 {dimension_numbers = #tpu.dot_dimension_numbers<[1], [0], [0], [1], [0, 0, 1, 1], [], []>} : vector<8x10xf32>, vector<10x160xf32>, vector<8x160xf32> -> vector<8x160xf32>
    %15 = arith.mulf %2, %14 : vector<8x160xf32>
    %c0_11 = arith.constant 0 : index
    %c0_12 = arith.constant 0 : index
    %16 = vector.load %arg5[%c0_11, %c0_12] : memref<8x160xf32, #tpu.memory_space<vmem>>, vector<8x160xf32>
    tpu.vector_store %arg5[%c0_11, %c0_12], %15 {strides = array<i32>} : memref<8x160xf32, #tpu.memory_space<vmem>>, vector<8x160xf32>,
    return
  }
  func.func @transform_0(%arg0: i32) -> (i32, i32) {
    %c0_i32 = arith.constant 0 : i32
    %c0_i32_0 = arith.constant 0 : i32
    return %arg0, %c0_i32 : i32, i32
  }
  func.func @transform_1(%arg0: i32) -> (i32, i32) {
    %c0_i32 = arith.constant 0 : i32
    %c0_i32_0 = arith.constant 0 : i32
    %c0_i32_1 = arith.constant 0 : i32
    return %c0_i32, %c0_i32_0 : i32, i32
  }
  func.func @transform_2(%arg0: i32) -> (i32, i32) {
    %c0_i32 = arith.constant 0 : i32
    %c0_i32_0 = arith.constant 0 : i32
    %c0_i32_1 = arith.constant 0 : i32
    return %c0_i32, %c0_i32_0 : i32, i32
  }
  func.func @transform_3(%arg0: i32) -> (i32, i32) {
    %c0_i32 = arith.constant 0 : i32
    %c0_i32_0 = arith.constant 0 : i32
    %c0_i32_1 = arith.constant 0 : i32
    return %c0_i32, %c0_i32_0 : i32, i32
  }
  func.func @transform_4(%arg0: i32) -> (i32, i32) {
    %c0_i32 = arith.constant 0 : i32
    %c0_i32_0 = arith.constant 0 : i32
    return %arg0, %c0_i32 : i32, i32
  }
}

</mosaic_0001>

<bundles_post_ra>
// kernel: digit_layer_forward.1
= control target key start
LH: loop header
LB: loop body
LE: loop exit
PB: predicated region body
PF: predicated region fallthrough
CT: control target
= control target key end

     0   :  { %v359_v3 = vmov 0.0   ;;  %vm176_vm0 = vcmask 261120   ;;  %vm264_vm1 = vcmask 1041408   ;;  %vm260_vm2 = vcmask 80896   ;;  %s684_s1 = inlined_call_operand.vmem [shape: f32[256,160], index: 1, kind: input, shape index: {}]   ;;  %s685_s0 = inlined_call_operand.vmem [shape: f32[8,256], index: 0, kind: input, shape index: {}]   ;;  %s686_s2 = inlined_call_operand.vmem [shape: f32[160,10], index: 2, kind: input, shape index: {}]   ;;  %s687_s3 = inlined_call_operand.vmem [shape: f32[10,160], index: 3, kind: input, shape index: {}]   ;;  %s688_s4 = inlined_call_operand.vmem [shape: f32[8,160], index: 4, kind: output, shape index: {}]  }
   0x1   :  { %v50_v0 = vld [vmem:[%s684_s1 + $0xf8] sm:$0xff]  ;;  %v49_v1 = vld [vmem:[%s684_s1 + $0xf0] sm:$0xff]  ;;  %v48_v2 = vld [vmem:[%s684_s1 + $0xe8] sm:$0xff]  ;;  %180 = vmatprep.subr.mxu1 %v359_v3 }
   0x2   :  { %83 = vmatprep.subr.mxu0 %v50_v0  ;;  %v47_v4 = vld [vmem:[%s684_s1 + $0xe0] sm:$0xff]  ;;  %v46_v5 = vld [vmem:[%s684_s1 + $0xd8] sm:$0xff]  ;;  %v45_v6 = vld [vmem:[%s684_s1 + $0xd0] sm:$0xff] }
   0x3   :  { %84 = vmatpush1.msra.mxu0 %v49_v1  ;;  %v44_v7 = vld [vmem:[%s684_s1 + $0xc8] sm:$0xff]  ;;  %v43_v8 = vld [vmem:[%s684_s1 + $0xc0] sm:$0xff]  ;;  %v42_v9 = vld [vmem:[%s684_s1 + $0xb8] sm:$0xff] }
   0x4   :  { %85 = vmatprep.subr.mxu0 %v48_v2  ;;  %v41_v10 = vld [vmem:[%s684_s1 + $0xb0] sm:$0xff]  ;;  %v40_v11 = vld [vmem:[%s684_s1 + $0xa8] sm:$0xff]  ;;  %v39_v12 = vld [vmem:[%s684_s1 + $0xa0] sm:$0xff] }
   0x5   :  { %86 = vmatpush1.msra.mxu0 %v47_v4  ;;  %v38_v13 = vld [vmem:[%s684_s1 + $0x98] sm:$0xff]  ;;  %v37_v14 = vld [vmem:[%s684_s1 + $0x90] sm:$0xff]  ;;  %v36_v15 = vld [vmem:[%s684_s1 + $0x88] sm:$0xff] }
   0x6   :  { %87 = vmatprep.subr.mxu0 %v46_v5  ;;  %v35_v16 = vld [vmem:[%s684_s1 + $0x80] sm:$0xff]  ;;  %v34_v17 = vld [vmem:[%s684_s1 + $0x78] sm:$0xff]  ;;  %v33_v18 = vld [vmem:[%s684_s1 + $0x70] sm:$0xff] }
   0x7   :  { %88 = vmatpush1.msra.mxu0 %v45_v6  ;;  %v32_v19 = vld [vmem:[%s684_s1 + $0x68] sm:$0xff]  ;;  %v31_v20 = vld [vmem:[%s684_s1 + $0x60] sm:$0xff]  ;;  %v30_v21 = vld [vmem:[%s684_s1 + $0x58] sm:$0xff] }
   0x8   :  { %89 = vmatprep.subr.mxu0 %v44_v7  ;;  %v29_v22 = vld [vmem:[%s684_s1 + $0x50] sm:$0xff]  ;;  %v28_v23 = vld [vmem:[%s684_s1 + $0x48] sm:$0xff]  ;;  %v27_v24 = vld [vmem:[%s684_s1 + $0x40] sm:$0xff] }
   0x9   :  { %90 = vmatpush1.msra.mxu0 %v43_v8  ;;  %v18_v25 = vld [vmem:[%s685_s0 + $0x8] sm:$0xff]  ;;  %v26_v26 = vld [vmem:[%s684_s1 + $0x38] sm:$0xff]  ;;  %v170_v28 = vld [vmem:[%s686_s2 + $0x70] sm:$0xff] }
   0xa   :  { %91 = vmatprep.subr.mxu0 %v42_v9  ;;  %147 = vmatprep.mubr.f32.mxu0 %v18_v25  ;;  %v171_v27 = vld [vmem:[%s686_s2 + $0x78] sm:$0xff]  ;;  %v25_v29 = vld [vmem:[%s684_s1 + $0x30] sm:$0xff]  ;;  %v24_v30 = vld [vmem:[%s684_s1 + $0x28] sm:$0xff] }
   0xb   :  { %92 = vmatpush1.msra.mxu0 %v41_v10  ;;  %181 = vmatpush1.msra.mxu1 %v171_v27  ;;  %v169_v31 = vld [vmem:[%s686_s2 + $0x68] sm:$0xff]  ;;  %v23_v32 = vld [vmem:[%s684_s1 + $0x20] sm:$0xff]  ;;  %v22_v33 = vld [vmem:[%s684_s1 + $0x18] sm:$0xff] }
   0xc   :  { %93 = vmatprep.subr.mxu0 %v40_v11  ;;  %182 = vmatprep.subr.mxu1 %v359_v3  ;;  %v168_v34 = vld [vmem:[%s686_s2 + $0x60] sm:$0xff]  ;;  %v21_v35 = vld [vmem:[%s684_s1 + $0x10] sm:$0xff]  ;;  %v20_v36 = vld [vmem:[%s684_s1 + $0x8] sm:$0xff] }
   0xd   :  { %94 = vmatpush1.msra.mxu0 %v39_v12  ;;  %183 = vmatpush1.msra.mxu1 %v170_v28  ;;  %v167_v37 = vld [vmem:[%s686_s2 + $0x58] sm:$0xff]  ;;  %v19_v38 = vld [vmem:[%s684_s1] sm:$0xff]  ;;  %v166_v40 = vld [vmem:[%s686_s2 + $0x50] sm:$0xff] }
   0xe   :  { %95 = vmatprep.subr.mxu0 %v38_v13  ;;  %184 = vmatprep.subr.mxu1 %v359_v3  ;;  %v82_v39 = vld [vmem:[%s684_s1 + $0x1f8] sm:$0xff]  ;;  %v81_v41 = vld [vmem:[%s684_s1 + $0x1f0] sm:$0xff]  ;;  %v80_v42 = vld [vmem:[%s684_s1 + $0x1e8] sm:$0xff] }
   0xf   :  { %96 = vmatpush1.msra.mxu0 %v37_v14  ;;  %185 = vmatpush1.msra.mxu1 %v169_v31  ;;  %v165_v43 = vld [vmem:[%s686_s2 + $0x48] sm:$0xff]  ;;  %v79_v44 = vld [vmem:[%s684_s1 + $0x1e0] sm:$0xff]  ;;  %v78_v45 = vld [vmem:[%s684_s1 + $0x1d8] sm:$0xff] }
  0x10   :  { %97 = vmatprep.subr.mxu0 %v36_v15  ;;  %186 = vmatprep.subr.mxu1 %v359_v3  ;;  %v164_v46 = vld [vmem:[%s686_s2 + $0x40] sm:$0xff]  ;;  %v77_v47 = vld [vmem:[%s684_s1 + $0x1d0] sm:$0xff]  ;;  %v76_v48 = vld [vmem:[%s684_s1 + $0x1c8] sm:$0xff] }
  0x11   :  { %98 = vmatpush1.msra.mxu0 %v35_v16  ;;  %187 = vmatpush1.msra.mxu1 %v168_v34  ;;  %v163_v49 = vld [vmem:[%s686_s2 + $0x38] sm:$0xff]  ;;  %v75_v50 = vld [vmem:[%s684_s1 + $0x1c0] sm:$0xff]  ;;  %v162_v52 = vld [vmem:[%s686_s2 + $0x30] sm:$0xff] }
  0x12   :  { %99 = vmatprep.subr.mxu0 %v34_v17  ;;  %188 = vmatprep.subr.mxu1 %v359_v3  ;;  %v74_v51 = vld [vmem:[%s684_s1 + $0x1b8] sm:$0xff]  ;;  %v73_v53 = vld [vmem:[%s684_s1 + $0x1b0] sm:$0xff]  ;;  %v72_v54 = vld [vmem:[%s684_s1 + $0x1a8] sm:$0xff] }
  0x13   :  { %100 = vmatpush1.msra.mxu0 %v33_v18  ;;  %189 = vmatpush1.msra.mxu1 %v167_v37  ;;  %v161_v55 = vld [vmem:[%s686_s2 + $0x28] sm:$0xff]  ;;  %v71_v56 = vld [vmem:[%s684_s1 + $0x1a0] sm:$0xff]  ;;  %v70_v57 = vld [vmem:[%s684_s1 + $0x198] sm:$0xff] }
  0x14   :  { %101 = vmatprep.subr.mxu0 %v32_v19  ;;  %190 = vmatprep.subr.mxu1 %v359_v3  ;;  %v160_v58 = vld [vmem:[%s686_s2 + $0x20] sm:$0xff]  ;;  %v69_v59 = vld [vmem:[%s684_s1 + $0x190] sm:$0xff]  ;;  %v68_v60 = vld [vmem:[%s684_s1 + $0x188] sm:$0xff] }
  0x15   :  { %102 = vmatpush1.msra.mxu0 %v31_v20  ;;  %191 = vmatpush1.msra.mxu1 %v166_v40  ;;  %v159_v61 = vld [vmem:[%s686_s2 + $0x18] sm:$0xff]  ;;  %v67_v62 = vld [vmem:[%s684_s1 + $0x180] sm:$0xff]  ;;  %v158_v0 = vld [vmem:[%s686_s2 + $0x10] sm:$0xff] }
  0x16   :  { %103 = vmatprep.subr.mxu0 %v30_v21  ;;  %192 = vmatprep.subr.mxu1 %v359_v3  ;;  %v66_v63 = vld [vmem:[%s684_s1 + $0x178] sm:$0xff]  ;;  %v65_v1 = vld [vmem:[%s684_s1 + $0x170] sm:$0xff]  ;;  %v64_v2 = vld [vmem:[%s684_s1 + $0x168] sm:$0xff] }
  0x17   :  { %104 = vmatpush1.msra.mxu0 %v29_v22  ;;  %193 = vmatpush1.msra.mxu1 %v165_v43  ;;  %v157_v4 = vld [vmem:[%s686_s2 + $0x8] sm:$0xff]  ;;  %v63_v5 = vld [vmem:[%s684_s1 + $0x160] sm:$0xff]  ;;  %v62_v6 = vld [vmem:[%s684_s1 + $0x158] sm:$0xff] }
  0x18   :  { %105 = vmatprep.subr.mxu0 %v28_v23  ;;  %194 = vmatprep.subr.mxu1 %v359_v3  ;;  %v156_v7 = vld [vmem:[%s686_s2] sm:$0xff]  ;;  %v61_v8 = vld [vmem:[%s684_s1 + $0x150] sm:$0xff]  ;;  %v60_v9 = vld [vmem:[%s684_s1 + $0x148] sm:$0xff] }
  0x19   :  { %106 = vmatpush1.msra.mxu0 %v27_v24  ;;  %195 = vmatpush1.msra.mxu1 %v164_v46  ;;  %v175_v10 = vld [vmem:[%s686_s2 + $0x98] sm:$0xff]  ;;  %v59_v11 = vld [vmem:[%s684_s1 + $0x140] sm:$0xff]  ;;  %v57_v13 = vld [vmem:[%s684_s1 + $0x130] sm:$0xff] }
  0x1a   :  { %107 = vmatprep.subr.mxu0 %v26_v26  ;;  %196 = vmatprep.subr.mxu1 %v359_v3  ;;  %v58_v12 = vld [vmem:[%s684_s1 + $0x138] sm:$0xff]  ;;  %v56_v14 = vld [vmem:[%s684_s1 + $0x128] sm:$0xff]  ;;  %v55_v15 = vld [vmem:[%s684_s1 + $0x120] sm:$0xff] }
  0x1b   :  { %108 = vmatpush1.msra.mxu0 %v25_v29  ;;  %197 = vmatpush1.msra.mxu1 %v163_v49  ;;  %v54_v16 = vld [vmem:[%s684_s1 + $0x118] sm:$0xff]  ;;  %v53_v17 = vld [vmem:[%s684_s1 + $0x110] sm:$0xff]  ;;  %v52_v18 = vld [vmem:[%s684_s1 + $0x108] sm:$0xff] }
  0x1c   :  { %109 = vmatprep.subr.mxu0 %v24_v30  ;;  %198 = vmatprep.subr.mxu1 %v359_v3  ;;  %v51_v19 = vld [vmem:[%s684_s1 + $0x100] sm:$0xff]  ;;  %v174_v21 = vld [vmem:[%s686_s2 + $0x90] sm:$0xff]  ;;  %v173_v22 = vld [vmem:[%s686_s2 + $0x88] sm:$0xff] }
  0x1d   :  { %110 = vmatpush1.msra.mxu0 %v23_v32  ;;  %199 = vmatpush1.msra.mxu1 %v162_v52  ;;  %v17_v20 = vld [vmem:[%s685_s0] sm:$0xff]  ;;  %v259_v28 = vld [vmem:[%s687_s3 + $0x18] sm:$0x3]  ;;  %v258_v29 = vld [vmem:[%s687_s3 + $0x10] sm:$0x3] }
  0x1e   :  { %111 = vmatprep.subr.mxu0 %v22_v33  ;;  %200 = vmatprep.subr.mxu1 %v359_v3  ;;  %v172_v23 = vld [vmem:[%s686_s2 + $0x80] sm:$0xff]  ;;  %v257_v30 = vld [vmem:[%s687_s3 + $0x8] sm:$0xff] }
  0x1f   :  { %112 = vmatpush1.msra.mxu0 %v21_v35  ;;  %201 = vmatpush1.msra.mxu1 %v161_v55  ;;  %v256_v31 = vld [vmem:[%s687_s3] sm:$0xff] }
  0x20   :  { %113 = vmatprep.subr.mxu0 %v20_v36  ;;  %202 = vmatprep.subr.mxu1 %v359_v3 }
  0x21   :  { %114 = vmatpush1.msra.mxu0 %v19_v38  ;;  %203 = vmatpush1.msra.mxu1 %v160_v58 }
  0x22   :  { %115 = vmatprep.subr.mxu0 %v82_v39  ;;  %204 = vmatprep.subr.mxu1 %v359_v3 }
  0x23   :  { %116 = vmatpush2.msra.mxu0 %v81_v41  ;;  %205 = vmatpush1.msra.mxu1 %v159_v61 }
  0x24   :  { %117 = vmatprep.subr.mxu0 %v80_v42  ;;  %206 = vmatprep.subr.mxu1 %v359_v3 }
  0x25   :  { %118 = vmatpush2.msra.mxu0 %v79_v44  ;;  %207 = vmatpush1.msra.mxu1 %v158_v0 }
  0x26   :  { %119 = vmatprep.subr.mxu0 %v78_v45  ;;  %208 = vmatprep.subr.mxu1 %v359_v3 }
  0x27   :  { %120 = vmatpush2.msra.mxu0 %v77_v47  ;;  %209 = vmatpush1.msra.mxu1 %v157_v4 }
  0x28   :  { %121 = vmatprep.subr.mxu0 %v76_v48  ;;  %210 = vmatprep.subr.mxu1 %v359_v3 }
  0x29   :  { %122 = vmatpush2.msra.mxu0 %v75_v50  ;;  %211 = vmatpush1.msra.mxu1 %v156_v7 }
  0x2a   :  { %123 = vmatprep.subr.mxu0 %v74_v51  ;;  %236 = vmatprep.subr.mxu1 %v359_v3 }
  0x2b   :  { %124 = vmatpush2.msra.mxu0 %v73_v53  ;;  %237 = vmatpush2.msra.mxu1 %v175_v10 }
  0x2c   :  { %125 = vmatprep.subr.mxu0 %v72_v54  ;;  %238 = vmatprep.subr.mxu1 %v359_v3 }
  0x2d   :  { %126 = vmatpush2.msra.mxu0 %v71_v56  ;;  %239 = vmatpush2.msra.mxu1 %v174_v21 }
  0x2e   :  { %127 = vmatprep.subr.mxu0 %v70_v57  ;;  %240 = vmatprep.subr.mxu1 %v359_v3 }
  0x2f   :  { %128 = vmatpush2.msra.mxu0 %v69_v59  ;;  %241 = vmatpush2.msra.mxu1 %v173_v22 }
  0x30   :  { %129 = vmatprep.subr.mxu0 %v68_v60  ;;  %242 = vmatprep.subr.mxu1 %v359_v3 }
  0x31   :  { %130 = vmatpush2.msra.mxu0 %v67_v62  ;;  %243 = vmatpush2.msra.mxu1 %v172_v23 }
  0x32   :  { %131 = vmatprep.subr.mxu0 %v66_v63  ;;  %351 = vmatprep.subr.msk.mxu1 %vm264_vm1, %v259_v28 }
  0x33   :  { %132 = vmatpush2.msra.mxu0 %v65_v1 }
  0x34   :  { %133 = vmatprep.subr.mxu0 %v64_v2 }
  0x35   :  { %134 = vmatpush2.msra.mxu0 %v63_v5 }
  0x36   :  { %135 = vmatprep.subr.mxu0 %v62_v6 }
  0x37   :  { %136 = vmatpush2.msra.mxu0 %v61_v8 }
  0x38   :  { %137 = vmatprep.subr.mxu0 %v60_v9 }
  0x39   :  { %138 = vmatpush2.msra.mxu0 %v59_v11 }
  0x3a   :  { %139 = vmatprep.subr.mxu0 %v58_v12 }
  0x3b   :  { %140 = vmatpush2.msra.mxu0 %v57_v13 }
  0x3c   :  { %141 = vmatprep.subr.mxu0 %v56_v14 }
  0x3d   :  { %142 = vmatpush2.msra.mxu0 %v55_v15 }
  0x3e   :  { %143 = vmatprep.subr.mxu0 %v54_v16 }
  0x3f   :  { %144 = vmatpush2.msra.mxu0 %v53_v17 }
  0x40   :  { %145 = vmatprep.subr.mxu0 %v52_v18 }
  0x41   :  { %146 = vmatpush2.msra.mxu0 %v51_v19 }
  0x42   :  { %148 = vmatmul.mubr.f32.vlgmr.msra.gmra.mxu0 %v17_v20 }
 0x102   :  { %v149_v24 = vpop.f32.mrf.mxu0 }
 0x103   :  { %v154_v27 = vmul.f32 %v149_v24, %v149_v24 }
 0x104   :  { %v151_v25 = vpop.f32.mrf.mxu0 }
 0x105   :  { %v155_v26 = vmul.f32 %v151_v25, %v151_v25 }
 0x107   :  { %350 = vmatprep.mubr.msk.f32.mxu1 %vm176_vm0, %v155_v26 }
 0x108   :  { %245 = vmatmul.mubr.f32.vlgmr.msra.gmra.mxu1 %v154_v27 }
 0x109   :  { %335 = vmatprep.mubr.f32.mxu1 %v359_v3  ;;  %352 = vmatpush1.msk.msra.mxu1 %vm264_vm1, %v258_v29 }
 0x10a   :  { %301 = vmatprep.subr.mxu1 %v257_v30 }
 0x10b   :  { %302 = vmatpush1.msra.mxu1 %v256_v31 }
 0x1c8   :  { %v246_v3 = vpop.f32.mrf.mxu1 }
 0x1c9   :  { %v250_v32 = vadd.f32 1e-09, %v246_v3  ;;  %v253_v33 = vadd.f32 1.0, %v246_v3 }
 0x1ca   :  { %v248_v34 = vpop.f32.mrf.mxu1 }
 0x1cb   :  { %355 = vrsqrt.f32 %v250_v32 }
 0x1cc   :  { %357 = vrcp.f32 %v253_v33 }
 0x1d8   :  { %v356_v35 = vpop.eup %355 }
 0x1d9   :  { %v252_v36 = vmul.f32 %v356_v35, %v246_v3  ;;  %v358_v37 = vpop.eup %357 }
 0x1db   :  { %v255_v38 = vmul.f32 %v358_v37, %v252_v36 }
 0x1dd   :  { %353 = vmatmul.mubr.msk.f32.vlgmr.msra.gmra.mxu1 %vm260_vm2, %v255_v38 }
 0x29d   :  { %v337_v39 = vpop.f32.mrf.mxu1 }
 0x29e   :  { %v342_v40 = vmul.f32 %v337_v39, %v149_v24 }
 0x29f   :  { %v339_v41 = vpop.f32.mrf.mxu1 }
 0x2a0   :  { %344 = vst [vmem:[%s688_s4] sm:$0xff] %v342_v40  ;;  %v343_v42 = vmul.f32 %v339_v41, %v151_v25 }
 0x2a2   :  { %345 = vst.msk [vmem:[%s688_s4 + $0x8] sm:$0xff] %vm176_vm0, %v343_v42 }

</bundles_post_ra>
